<compile_context>
chip_gen: v7x
topology: tpu7x:2x2x1
jax: 0.10.0
libtpu: 0.0.40
codegen_flags: <defaults>
</compile_context>

<pallas_src>
import jax
import jax.numpy as jnp
from jax.experimental import pallas as pl
from jax.experimental.pallas import tpu as pltpu

_LANES = 128


def _hw_budget():
    """(default block_rows, vmem_limit cap) picked per TPU generation."""
    vmem_phys = None
    try:
        info = pltpu.get_tpu_info()
        vmem_phys = int(getattr(info, "vmem_capacity_bytes"))
    except Exception:
        vmem_phys = None
    if vmem_phys is None:
        # Conservative fallback: assume the smallest VMEM (v7x-class, 64 MiB).
        return 4096, 48 << 20
    if vmem_phys <= (80 << 20):          # v7x-class: 64 MiB per TensorCore
        return 8192, 48 << 20
    return 4096, 64 << 20                # v5e / v6e: 128 MiB physical


def _sub_mult(dtype):
    """Minimum legal sublane multiple for this dtype's packing."""
    return {4: 8, 2: 16, 1: 32}.get(jnp.dtype(dtype).itemsize, 8)


def _make_kernel(block_rows, acc_rows, rows, blocks_per_core, has_mask,
                 needs_tail_mask):
    """Builds the kernel body for a given static configuration."""
    sub = block_rows // acc_rows

    def kernel(*refs):
        if has_mask:
            pred_ref, target_ref, mask_ref, out_ref, acc_ref = refs
        else:
            pred_ref, target_ref, out_ref, acc_ref = refs
            mask_ref = None

        c = pl.program_id(0)   # core / outer split ("parallel")
        s = pl.program_id(1)   # block walk within the split ("arbitrary")

        @pl.when(s == 0)
        def _():
            acc_ref[...] = jnp.zeros_like(acc_ref)

        diff = (pred_ref[...].astype(jnp.float32)
                - target_ref[...].astype(jnp.float32))
        sq = diff * diff
        if has_mask:
            sq = sq * mask_ref[...].astype(jnp.float32)

        def fold(x):
            # (block_rows,128) -> (acc_rows,128) via elementwise vreg adds;
            # acc_rows independent partial rows keep the add chain short.
            return x.reshape(sub, acc_rows, _LANES).sum(axis=0)

        if needs_tail_mask:
            blk = c * blocks_per_core + s
            is_full = (blk + 1) * block_rows <= rows

            @pl.when(is_full)
            def _():
                acc_ref[...] += fold(sq)

            @pl.when(jnp.logical_not(is_full))
            def _():
                # Partial last block (OOB rows hold unspecified data) or the
                # over-run block of an odd 2-core split (its block index is
                # clamped in the index_map, so the whole block is discarded).
                # Must stay a jnp.where (not a multiply): OOB data may be
                # inf/NaN and is only safe because where discards it.
                row_in_tile = jax.lax.broadcasted_iota(
                    jnp.int32, (block_rows, _LANES), 0)
                global_row = blk * block_rows + row_in_tile
                acc_ref[...] += fold(jnp.where(global_row < rows, sq, 0.0))
        else:
            acc_ref[...] += fold(sq)

        @pl.when(s == pl.num_programs(1) - 1)
        def _():
            # Lane-dense per-core partial output; final reduce happens in the
            # wrapper (no in-kernel cross-lane XLU reduce / masked store).
            out_ref[...] = acc_ref[...]

    return kernel


def mse_with_roi_loss(pred, target, roi_mask=None, *, block_rows=None):
    """Pallas implementation of MSEwithROILoss.forward. Returns a scalar f32."""
    assert pred.shape == target.shape
    has_mask = roi_mask is not None
    if has_mask:
        assert roi_mask.shape == pred.shape

    arrays = [pred, target] + ([roi_mask] if has_mask else [])

    total = 1
    for d in pred.shape:
        total *= d

    # Dtype-aware sublane multiple so narrow mask dtypes keep legal tiles.
    m = max(_sub_mult(x.dtype) for x in arrays)
    unit = m * _LANES

    flats = [x.reshape(-1) for x in arrays]
    aligned = (total // unit) * unit
    tail_sum = jnp.zeros((), jnp.float32)

    if aligned == 0:
        # Tiny input (< one unit): pad it (zero diff contributes nothing).
        pad = unit - total
        flats = [jnp.pad(x, (0, pad)) for x in flats]
        aligned = unit
    elif aligned != total:
        # Ragged tail (< unit elements): reduce it with plain jnp and stream
        # only the aligned prefix through the kernel (avoids rewriting the
        # full arrays through HBM with jnp.pad).
        tails = [x[aligned:] for x in flats]
        d = tails[0].astype(jnp.float32) - tails[1].astype(jnp.float32)
        t = d * d
        if has_mask:
            t = t * tails[2].astype(jnp.float32)
        tail_sum = jnp.sum(t)
        flats = [x[:aligned] for x in flats]

    rows = aligned // _LANES
    slabs = [x.reshape(rows, _LANES) for x in flats]

    default_rows, vmem_cap = _hw_budget()
    if block_rows is None:
        block_rows = default_rows

    bytes_per_row = _LANES * sum(jnp.dtype(x.dtype).itemsize for x in slabs)
    # Double-buffered streams + one tile of elementwise headroom must fit.
    fit_rows = max((vmem_cap - (4 << 20)) // (3 * bytes_per_row), m)
    block_rows = min(block_rows, rows, fit_rows)
    block_rows = max(m, (block_rows // m) * m)

    total_blocks = pl.cdiv(rows, block_rows)
    # Leading "parallel" axis of size 2 so v7x can shard across both
    # TensorCores; on 1-TC chips it is just a sequential outer loop.
    num_cores = 2 if total_blocks >= 2 else 1
    blocks_per_core = pl.cdiv(total_blocks, num_cores)
    needs_tail_mask = (num_cores * blocks_per_core * block_rows != rows)

    # Widest accumulator that divides the block (shorter dependent add chain).
    if block_rows % 64 == 0:
        acc_rows = 64
    elif block_rows % 32 == 0:
        acc_rows = 32
    elif block_rows % 16 == 0:
        acc_rows = 16
    else:
        acc_rows = 8

    kernel = _make_kernel(block_rows, acc_rows, rows, blocks_per_core,
                          has_mask, needs_tail_mask)

    def in_map(c, s):
        blk = c * blocks_per_core + s
        # Clamp the over-run block of an odd 2-core split; its contribution
        # is zeroed by the in-kernel global-row mask.
        return (jnp.minimum(blk, total_blocks - 1), 0)

    in_specs = [pl.BlockSpec((block_rows, _LANES), in_map) for _ in slabs]

    tile_bytes = block_rows * bytes_per_row
    vmem_limit = int(min(vmem_cap, max(3 * tile_bytes + (4 << 20), 32 << 20)))

    out = pl.pallas_call(
        kernel,
        out_shape=jax.ShapeDtypeStruct((num_cores * acc_rows, _LANES),
                                       jnp.float32),
        grid_spec=pltpu.PrefetchScalarGridSpec(
            num_scalar_prefetch=0,
            grid=(num_cores, blocks_per_core),
            in_specs=in_specs,
            out_specs=pl.BlockSpec((acc_rows, _LANES), lambda c, s: (c, 0)),
            scratch_shapes=[pltpu.VMEM((acc_rows, _LANES), jnp.float32)],
        ),
        compiler_params=pltpu.CompilerParams(
            dimension_semantics=("parallel", "arbitrary"),
            vmem_limit_bytes=vmem_limit,
        ),
    )(*slabs)
    return jnp.sum(out) + tail_sum


def _ref_loss(pred, target, roi_mask=None):
    loss = (pred.astype(jnp.float32) - target.astype(jnp.float32)) ** 2
    if roi_mask is not None:
        loss = loss * roi_mask.astype(jnp.float32)
    return jnp.sum(loss)


if __name__ == "__main__":
    key = jax.random.PRNGKey(0)
    keys = jax.random.split(key, 12)

    # NCHW, small shapes: batch=2, channels=4, spatial=16x16
    pred = jax.random.normal(keys[0], (2, 4, 16, 16), dtype=jnp.float32)
    target = jax.random.normal(keys[1], (2, 4, 16, 16), dtype=jnp.float32)
    roi_mask = (jax.random.uniform(keys[2], (2, 4, 16, 16)) > 0.5).astype(
        jnp.float32)

    # With ROI mask
    loss_masked = mse_with_roi_loss(pred, target, roi_mask)
    jax.block_until_ready(loss_masked)
    # Without ROI mask (2-input kernel, no ones-mask stream)
    loss_plain = mse_with_roi_loss(pred, target, None)
    jax.block_until_ready(loss_plain)

    assert jnp.allclose(loss_masked, _ref_loss(pred, target, roi_mask),
                        rtol=1e-5, atol=1e-5)
    assert jnp.allclose(loss_plain, _ref_loss(pred, target),
                        rtol=1e-5, atol=1e-5)

    # Multi-block path: even split with a partial last block (in-kernel tail
    # mask on the last block only, via the runtime pl.when gate).
    pred2 = jax.random.normal(keys[3], (2, 4, 16, 24), dtype=jnp.float32)
    target2 = jax.random.normal(keys[4], (2, 4, 16, 24), dtype=jnp.float32)
    mask2 = (jax.random.uniform(keys[5], (2, 4, 16, 24)) > 0.5).astype(
        jnp.float32)
    loss2 = mse_with_roi_loss(pred2, target2, mask2, block_rows=16)
    jax.block_until_ready(loss2)
    assert jnp.allclose(loss2, _ref_loss(pred2, target2, mask2),
                        rtol=1e-5, atol=1e-5)

    # Odd block count: 3 blocks over the 2-way split -> one clamped over-run
    # block whose contribution is zeroed by the global-row mask.
    loss3 = mse_with_roi_loss(pred2, target2, mask2, block_rows=8)
    jax.block_until_ready(loss3)
    assert jnp.allclose(loss3, _ref_loss(pred2, target2, mask2),
                        rtol=1e-5, atol=1e-5)

    # Ragged flat size (3840 = 3*1024 + 768): aligned prefix goes through the
    # kernel, the tail is reduced with plain jnp (no full-array jnp.pad).
    pred4 = jax.random.normal(keys[6], (3, 5, 16, 16), dtype=jnp.float32)
    target4 = jax.random.normal(keys[7], (3, 5, 16, 16), dtype=jnp.float32)
    mask4 = (jax.random.uniform(keys[8], (3, 5, 16, 16)) > 0.5).astype(
        jnp.float32)
    loss4 = mse_with_roi_loss(pred4, target4, mask4)
    jax.block_until_ready(loss4)
    assert jnp.allclose(loss4, _ref_loss(pred4, target4, mask4),
                        rtol=1e-5, atol=1e-5)

    print("KERNEL_OK")
</pallas_src>

<mosaic_0001>
module attributes {stable_mosaic.version = 11 : i64} {
  func.func @kernel(%arg0: i32, %arg1: i32, %arg2: memref<16x128xf32, #tpu.memory_space<vmem>>, %arg3: memref<16x128xf32, #tpu.memory_space<vmem>>, %arg4: memref<16x128xf32, #tpu.memory_space<vmem>>, %arg5: memref<16x128xf32, #tpu.memory_space<vmem>>, %arg6: memref<16x128xf32, #tpu.memory_space<vmem>>) attributes {dimension_semantics = [#tpu.dimension_semantics<parallel>, #tpu.dimension_semantics<arbitrary>], iteration_bounds = array<i64: 1, 1>, scalar_prefetch = 0 : i64, scratch_operands = 1 : i64, tpu.core_type = #tpu.core_type<tc>, window_params = [{transform_indices = @transform_0, window_bounds = array<i64: 16, 128>}, {transform_indices = @transform_1, window_bounds = array<i64: 16, 128>}, {transform_indices = @transform_2, window_bounds = array<i64: 16, 128>}, {transform_indices = @transform_3, window_bounds = array<i64: 16, 128>}]} {
    %c0_i32 = arith.constant 0 : i32
    %0 = arith.cmpi eq, %arg1, %c0_i32 : i32
    %1 = arith.extui %0 : i1 to i32
    %c0_i32_0 = arith.constant 0 : i32
    %2 = arith.cmpi ne, %1, %c0_i32_0 : i32
    scf.if %2 {
      %cst_12 = arith.constant 0.000000e+00 : f32
      %17 = vector.broadcast %cst_12 : f32 to vector<16x128xf32>
      %c0_13 = arith.constant 0 : index
      %c0_14 = arith.constant 0 : index
      %18 = vector.load %arg6[%c0_13, %c0_14] : memref<16x128xf32, #tpu.memory_space<vmem>>, vector<16x128xf32>
      tpu.vector_store %arg6[%c0_13, %c0_14], %17 {strides = array<i32>} : memref<16x128xf32, #tpu.memory_space<vmem>>, vector<16x128xf32>,
    } else {
    }
    %c0 = arith.constant 0 : index
    %c0_1 = arith.constant 0 : index
    %3 = vector.load %arg2[%c0, %c0_1] : memref<16x128xf32, #tpu.memory_space<vmem>>, vector<16x128xf32>
    %c0_2 = arith.constant 0 : index
    %c0_3 = arith.constant 0 : index
    %4 = vector.load %arg3[%c0_2, %c0_3] : memref<16x128xf32, #tpu.memory_space<vmem>>, vector<16x128xf32>
    %5 = arith.subf %3, %4 : vector<16x128xf32>
    %6 = arith.mulf %5, %5 : vector<16x128xf32>
    %c0_4 = arith.constant 0 : index
    %c0_5 = arith.constant 0 : index
    %7 = vector.load %arg4[%c0_4, %c0_5] : memref<16x128xf32, #tpu.memory_space<vmem>>, vector<16x128xf32>
    %8 = arith.mulf %6, %7 : vector<16x128xf32>
    %c0_6 = arith.constant 0 : index
    %c0_7 = arith.constant 0 : index
    %9 = vector.load %arg6[%c0_6, %c0_7] : memref<16x128xf32, #tpu.memory_space<vmem>>, vector<16x128xf32>
    %10 = vector.shape_cast %8 : vector<16x128xf32> to vector<1x16x128xf32>
    %cst = arith.constant dense<0.000000e+00> : vector<16x128xf32>
    %11 = vector.multi_reduction <add>, %10, %cst [0] : vector<1x16x128xf32> to vector<16x128xf32>
    %12 = arith.addf %9, %11 : vector<16x128xf32>
    %c0_8 = arith.constant 0 : index
    %c0_9 = arith.constant 0 : index
    %13 = vector.load %arg6[%c0_8, %c0_9] : memref<16x128xf32, #tpu.memory_space<vmem>>, vector<16x128xf32>
    tpu.vector_store %arg6[%c0_8, %c0_9], %12 {strides = array<i32>} : memref<16x128xf32, #tpu.memory_space<vmem>>, vector<16x128xf32>,
    %c0_i32_10 = arith.constant 0 : i32
    %14 = arith.cmpi eq, %arg1, %c0_i32_10 : i32
    %15 = arith.extui %14 : i1 to i32
    %c0_i32_11 = arith.constant 0 : i32
    %16 = arith.cmpi ne, %15, %c0_i32_11 : i32
    scf.if %16 {
      %c0_12 = arith.constant 0 : index
      %c0_13 = arith.constant 0 : index
      %17 = vector.load %arg6[%c0_12, %c0_13] : memref<16x128xf32, #tpu.memory_space<vmem>>, vector<16x128xf32>
      %c0_14 = arith.constant 0 : index
      %c0_15 = arith.constant 0 : index
      %18 = vector.load %arg5[%c0_14, %c0_15] : memref<16x128xf32, #tpu.memory_space<vmem>>, vector<16x128xf32>
      tpu.vector_store %arg5[%c0_14, %c0_15], %17 {strides = array<i32>} : memref<16x128xf32, #tpu.memory_space<vmem>>, vector<16x128xf32>,
    } else {
    }
    return
  }
  func.func @transform_0(%arg0: i32, %arg1: i32) -> (i32, i32) {
    %c1_i32 = arith.constant 1 : i32
    %0 = arith.muli %arg0, %c1_i32 : i32
    %1 = arith.addi %0, %arg1 : i32
    %c0_i32 = arith.constant 0 : i32
    %2 = arith.minsi %1, %c0_i32 : i32
    %c0_i32_0 = arith.constant 0 : i32
    %c0_i32_1 = arith.constant 0 : i32
    return %2, %c0_i32_0 : i32, i32
  }
  func.func @transform_1(%arg0: i32, %arg1: i32) -> (i32, i32) {
    %c1_i32 = arith.constant 1 : i32
    %0 = arith.muli %arg0, %c1_i32 : i32
    %1 = arith.addi %0, %arg1 : i32
    %c0_i32 = arith.constant 0 : i32
    %2 = arith.minsi %1, %c0_i32 : i32
    %c0_i32_0 = arith.constant 0 : i32
    %c0_i32_1 = arith.constant 0 : i32
    return %2, %c0_i32_0 : i32, i32
  }
  func.func @transform_2(%arg0: i32, %arg1: i32) -> (i32, i32) {
    %c1_i32 = arith.constant 1 : i32
    %0 = arith.muli %arg0, %c1_i32 : i32
    %1 = arith.addi %0, %arg1 : i32
    %c0_i32 = arith.constant 0 : i32
    %2 = arith.minsi %1, %c0_i32 : i32
    %c0_i32_0 = arith.constant 0 : i32
    %c0_i32_1 = arith.constant 0 : i32
    return %2, %c0_i32_0 : i32, i32
  }
  func.func @transform_3(%arg0: i32, %arg1: i32) -> (i32, i32) {
    %c0_i32 = arith.constant 0 : i32
    %c0_i32_0 = arith.constant 0 : i32
    return %arg0, %c0_i32 : i32, i32
  }
}

</mosaic_0001>

<bundles_post_ra>
// kernel: tpu_custom_call.1
= control target key start
LH: loop header
LB: loop body
LE: loop exit
PB: predicated region body
PF: predicated region fallthrough
CT: control target
= control target key end

     0   :  { %8 = vsyncpa [#allocation4], 0  ;;  %s336_s0 = inlined_call_operand.hbm [shape: f32[16,128], index: 0, kind: input, shape index: {}]   ;;  %s337_s1 = inlined_call_operand.hbm [shape: f32[16,128], index: 1, kind: input, shape index: {}]   ;;  %s338_s2 = inlined_call_operand.hbm [shape: f32[16,128], index: 2, kind: input, shape index: {}]   ;;  %s339_s3 = inlined_call_operand.hbm [shape: f32[16,128], index: 3, kind: output, shape index: {}]  }
   0x1   :  { %9 = vsyncpa [#allocation7], 0 }
   0x2   :  { %10 = vsyncpa [#allocation5], 0  ;;  %s243_s12 = smov [#allocation6]   ;;  %s244_s14 = smov [#allocation3]  }
   0x3   :  { %s40_s13 = sshll.u32 %s243_s12, 4  ;;  %s22_s15 = sshll.u32 %s244_s14, 4  ;;  %s41_s13 = int_to_ptr.vmem [resolvable:$true] %s40_s13  ;;  %s269_s15 = int_to_ptr.vmem [resolvable:$true] %s22_s15 }
   0x4   :  { %s149_s18 = scalar_lea.hbm %s337_s1, 256 }
   0x5   :  { %p150_p0 = scmp.ne.s32.totalorder %s337_s1, %s149_s18  ;;  %p153_p1 = scmp.lt.u32.totalorder %s149_s18, %s337_s1 }
   0x7   :  { %p155_p2 = pnand %p153_p1, %p150_p0 }
   0x9   :  { %158 = shalt.err (!%p155_p2)
}
   0xa   :  { %s159_s23 = scalar_lea.vmem %s41_s13, 256  ;;  %p164_p4 = scmp.lt.s32.totalorder %s41_s13, %s41_s13 }
   0xb   :  { %p160_p3 = scmp.ne.s32.totalorder %s41_s13, %s159_s23  ;;  %p165_p5 = scmp.lt.s32.totalorder %s159_s23, %s159_s23 }
   0xd   :  { %p166_p6 = por %p165_p5, %p164_p4 }
   0xf   :  { %p167_p7 = pnand %p166_p6, %p160_p3 }
  0x11   :  { %170 = shalt.err (!%p167_p7)
}
  0x12   :  { %s245_s24 = smov 128   ;;  %s246_s25 = smov 8  }
  0x13   :  { %46 = dma.hbm_to_vmem [thread:$0]  %s337_s1, 256, %s41_s13, [#allocation7], %s245_s24, %s245_s24, %s246_s25  }
  0x14   :  { %s171_s30 = scalar_lea.hbm %s336_s0, 256 }
  0x15   :  { %p172_p8 = scmp.ne.s32.totalorder %s336_s0, %s171_s30  ;;  %p175_p9 = scmp.lt.u32.totalorder %s171_s30, %s336_s0 }
  0x17   :  { %p177_p10 = pnand %p175_p9, %p172_p8 }
  0x19   :  { %180 = shalt.err (!%p177_p10)
}
  0x1a   :  { %s181_s8 = scalar_lea.vmem %s269_s15, 256  ;;  %p186_p12 = scmp.lt.s32.totalorder %s269_s15, %s269_s15 }
  0x1b   :  { %p182_p11 = scmp.ne.s32.totalorder %s269_s15, %s181_s8  ;;  %p187_p13 = scmp.lt.s32.totalorder %s181_s8, %s181_s8 }
  0x1d   :  { %p188_p0 = por %p187_p13, %p186_p12 }
  0x1f   :  { %p189_p1 = pnand %p188_p0, %p182_p11 }
  0x21   :  { %192 = shalt.err (!%p189_p1)
}
  0x22   :  { %28 = dma.hbm_to_vmem [thread:$0]  %s336_s0, 256, %s269_s15, [#allocation4], %s245_s24, %s245_s24, %s246_s25  }
  0x23   :  { %s247_s10 = smov [#allocation8]   ;;  %s193_s14 = scalar_lea.hbm %s338_s2, 256 }
  0x24   :  { %s58_s11 = sshll.u32 %s247_s10, 4  ;;  %p194_p2 = scmp.ne.s32.totalorder %s338_s2, %s193_s14  ;;  %s59_s11 = int_to_ptr.vmem [resolvable:$true] %s58_s11 }
  0x25   :  { %p197_p3 = scmp.lt.u32.totalorder %s193_s14, %s338_s2 }
  0x27   :  { %p199_p4 = pnand %p197_p3, %p194_p2 }
  0x29   :  { %202 = shalt.err (!%p199_p4)
}
  0x2a   :  { %s203_s20 = scalar_lea.vmem %s59_s11, 256  ;;  %p208_p6 = scmp.lt.s32.totalorder %s59_s11, %s59_s11 }
  0x2b   :  { %p204_p5 = scmp.ne.s32.totalorder %s59_s11, %s203_s20  ;;  %p209_p7 = scmp.lt.s32.totalorder %s203_s20, %s203_s20 }
  0x2d   :  { %p210_p8 = por %p209_p7, %p208_p6 }
  0x2f   :  { %p211_p9 = pnand %p210_p8, %p204_p5 }
  0x31   :  { %214 = shalt.err (!%p211_p9)
}
  0x32   :  { %64 = dma.hbm_to_vmem [thread:$0]  %s338_s2, 256, %s59_s11, [#allocation7], %s245_s24, %s245_s24, %s246_s25  }
  0x33   :  { %237 = dma.done.wait [#allocation4], 256  }
  0x34   :  { %238 = vsyncadd [#allocation4], 4294967040 }
  0x35   :  { %239 = dma.done.wait [#allocation7], 512  }
  0x36   :  { %240 = vsyncadd [#allocation7], 4294966784  ;;  %v92_v0 = vld [vmem:[#allocation3] sm:$0xff]  ;;  %v94_v1 = vld [vmem:[#allocation6] sm:$0xff]  ;;  %s248_s21 = smov [#allocation9]  }
  0x37   :  { %v96_v2 = vsub.f32 %v92_v0, %v94_v1  ;;  %v93_v3 = vld [vmem:[#allocation3 + $0x8] sm:$0xff]  ;;  %v95_v4 = vld [vmem:[#allocation6 + $0x8] sm:$0xff]  ;;  %v100_v5 = vld [vmem:[#allocation8] sm:$0xff]  ;;  %s124_s22 = sshll.u32 %s248_s21, 4  ;;  %s125_s22 = int_to_ptr.vmem [resolvable:$true] %s124_s22 }
  0x38   :  { %v97_v6 = vsub.f32 %v93_v3, %v95_v4  ;;  %v101_v8 = vld [vmem:[#allocation8 + $0x8] sm:$0xff]  ;;  %s215_s2 = scalar_lea.vmem %s125_s22, 256  ;;  %p220_p11 = scmp.lt.s32.totalorder %s125_s22, %s125_s22 }
  0x39   :  { %v98_v7 = vmul.f32 %v96_v2, %v96_v2  ;;  %p216_p10 = scmp.ne.s32.totalorder %s125_s22, %s215_s2  ;;  %p221_p12 = scmp.lt.s32.totalorder %s215_s2, %s215_s2 }
  0x3a   :  { %v99_v9 = vmul.f32 %v97_v6, %v97_v6 }
  0x3b   :  { %v102_v10 = vmul.f32 %v100_v5, %v98_v7  ;;  %p222_p13 = por %p221_p12, %p220_p11 }
  0x3c   :  { %v103_v11 = vmul.f32 %v101_v8, %v99_v9 }
  0x3d   :  { %117 = vst [vmem:[#allocation9] sm:$0xff] %v102_v10  ;;  %p223_p0 = pnand %p222_p13, %p216_p10 }
  0x3e   :  { %118 = vst [vmem:[#allocation9 + $0x8] sm:$0xff] %v103_v11 }
  0x3f   :  { %226 = shalt.err (!%p223_p0)
}
  0x40   :  { %s227_s27 = scalar_lea.hbm %s339_s3, 256 }
  0x41   :  { %p228_p1 = scmp.ne.s32.totalorder %s339_s3, %s227_s27  ;;  %p231_p2 = scmp.lt.u32.totalorder %s227_s27, %s339_s3 }
  0x43   :  { %p233_p3 = pnand %p231_p2, %p228_p1 }
  0x45   :  { %236 = shalt.err (!%p233_p3)
}
  0x46   :  { %130 = dma.vmem_to_hbm [thread:$0]  %s125_s22, 256, %s339_s3, [#allocation5], %s245_s24, %s245_s24, %s246_s25  }
  0x47   :  { %241 = dma.done.wait [#allocation5], 256  }
  0x48   :  { %242 = vsyncadd [#allocation5], 4294967040 }
  0x49   :  { %134 = vsyncpa [#allocation4], 1 }
  0x4a   :  { %135 = vsyncpa [#allocation7], 1 }
  0x4b   :  { %136 = vsyncpa [#allocation5], 1 }

</bundles_post_ra>
